<compile_context>
chip_gen: v6e
topology: v6e:2x2x1
jax: 0.10.0
libtpu: 0.0.40
codegen_flags: <defaults>
</compile_context>

<pallas_src>
import functools

import jax
import jax.numpy as jnp
from jax import lax
from jax.experimental import pallas as pl
from jax.experimental.pallas import tpu as pltpu

_BN_EPS = 1e-4          # BatchNorm2d(eps=0.0001) inside CBA
_LEAKY_SLOPE = 0.1      # nn.LeakyReLU(negative_slope=0.1)
_LANE_PAD = 128         # lane-aligned zero pad around each image's H*W lanes


# ------------------------------ Pallas kernel ------------------------------

def _yolov1_head_kernel(x_ref, w1_ref, w2_ref, o_ref, xp_ref, a_ref, y1_ref,
                        *, H, W, NB):
    """Fused 3x3 conv (+folded BN bias) + LeakyReLU + 1x1 conv (+bias).

    x_ref  : (NB, Cin, S)        channels-first, spatially flattened (S=H*W)
    w1_ref : (Cmid, 9*Cin + 1)   folded conv1 weight; last column = BN bias
    w2_ref : (Cout, Cmid + 1)    1x1 conv weight; last column = conv2 bias
    o_ref  : (NB, Cout, S)
    xp_ref : (Cin, NB*S + (NB+1)*P)   zero-padded per-image lane segments
    a_ref  : (9*Cin + 1, NB*S)        im2col matrix + constant ones row
    y1_ref : (Cmid + 1, NB*S)         conv1 activations + constant ones row
    """
    Cin = x_ref.shape[1]
    S = H * W
    P = _LANE_PAD
    Cmid = w1_ref.shape[0]
    K1 = w1_ref.shape[1]                                   # 9*Cin + 1

    # Setup: zero the (NB+1) pad regions + write the two constant ones rows.
    # Unconditional on purpose (see header note about megacore partitioning).
    for n in range(NB + 1):
        off = n * (S + P)
        xp_ref[:, off:off + P] = jnp.zeros((Cin, P), jnp.float32)
    a_ref[K1 - 1:K1, :] = jnp.ones((1, NB * S), jnp.float32)       # conv1 bias row
    y1_ref[Cmid:Cmid + 1, :] = jnp.ones((1, NB * S), jnp.float32)  # conv2 bias row

    # Shared left/right border masks.  No h-masks: the zero pads already make
    # the dh = +/-1 taps read zeros at the top/bottom image borders.
    s_idx = lax.broadcasted_iota(jnp.int32, (Cin, S), 1)
    w_idx = (s_idx & (W - 1)) if (W & (W - 1)) == 0 else (s_idx % W)
    w_ok = {-1: w_idx >= 1, 0: None, 1: w_idx < W - 1}

    # Copy each image into its own zero-padded lane segment.
    starts = [P + n * (S + P) for n in range(NB)]
    for n in range(NB):
        xp_ref[:, starts[n]:starts[n] + S] = x_ref[n]

    # im2col directly into VMEM scratch: 9 lane-shifted (and, for dw != 0,
    # masked) copies per image at sublane offset (kh*3 + kw) * Cin.
    for kh in range(3):
        dh = kh - 1
        for kw in range(3):
            dw = kw - 1
            r0 = (kh * 3 + kw) * Cin
            mask = w_ok[dw]
            for n in range(NB):
                off = starts[n] + dh * W + dw
                tap = xp_ref[:, off:off + S]               # (Cin, S)
                if mask is not None:
                    tap = jnp.where(mask, tap, 0.0)
                a_ref[r0:r0 + Cin, n * S:(n + 1) * S] = tap

    # 3x3 conv + folded BN bias in a single MXU dot (bias rides the ones row),
    # LeakyReLU on the VPU, result staged in VMEM for the second dot.
    y1 = jnp.dot(w1_ref[...], a_ref[...], preferred_element_type=jnp.float32)
    y1_ref[0:Cmid, :] = jnp.maximum(y1, _LEAKY_SLOPE * y1)

    # 1x1 conv + bias (ones row), one image at a time to bound the live vreg
    # footprint of the (Cout, S) result.  Stores are lane-dense (S >= 128).
    for n in range(NB):
        y2 = jnp.dot(w2_ref[...], y1_ref[:, n * S:(n + 1) * S],
                     preferred_element_type=jnp.float32)
        o_ref[n] = y2.astype(o_ref.dtype)


# --------------------------------- wrapper ----------------------------------

def _images_per_step_default(batch):
    """Batch-in-lanes on single-TC chips; per-image 'parallel' grid on v7x."""
    try:
        kind = jax.devices()[0].device_kind.lower()
    except Exception:
        kind = ""
    multi_tc = ("v7" in kind) or ("tpu7" in kind)
    return 1 if (multi_tc and batch > 1) else batch


def yolov1_head(x_nchw, w1_aug, w2_aug, *, images_per_step=None):
    """x_nchw: (N, Cin, H, W) float32.  Returns (N, Cout, H, W)."""
    N, Cin, H, W = x_nchw.shape
    Cmid = w1_aug.shape[0]
    Cout = w2_aug.shape[0]
    S = H * W
    assert w1_aug.shape[1] == 9 * Cin + 1
    assert w2_aug.shape[1] == Cmid + 1
    # TODO(synk): generalize to feature maps where H*W is not 128-aligned or
    # W + 1 > 128 (e.g. odd YOLO grid sizes) via lane padding of S.
    assert S % 128 == 0 and _LANE_PAD >= W + 1

    NB = images_per_step if images_per_step is not None \
        else _images_per_step_default(N)
    assert N % NB == 0

    x2d = x_nchw.reshape(N, Cin, S).astype(jnp.float32)    # contiguous / free

    out2d = pl.pallas_call(
        functools.partial(_yolov1_head_kernel, H=H, W=W, NB=NB),
        out_shape=jax.ShapeDtypeStruct((N, Cout, S), jnp.float32),
        grid=(N // NB,),
        in_specs=[
            pl.BlockSpec((NB, Cin, S), lambda g: (g, 0, 0)),
            pl.BlockSpec((Cmid, 9 * Cin + 1), lambda g: (0, 0)),
            pl.BlockSpec((Cout, Cmid + 1), lambda g: (0, 0)),
        ],
        out_specs=pl.BlockSpec((NB, Cout, S), lambda g: (g, 0, 0)),
        scratch_shapes=[
            pltpu.VMEM((Cin, NB * S + (NB + 1) * _LANE_PAD), jnp.float32),
            pltpu.VMEM((9 * Cin + 1, NB * S), jnp.float32),
            pltpu.VMEM((Cmid + 1, NB * S), jnp.float32),
        ],
        compiler_params=pltpu.CompilerParams(
            dimension_semantics=("parallel",)),
    )(x2d, w1_aug, w2_aug)
    return out2d.reshape(N, Cout, H, W)                    # contiguous / free


# ----------------------- parameter folding (glue) ---------------------------

def fold_params(w1, gamma, beta, mean, var, w2, b2):
    """Fold eval-mode BN into conv1 and fold both biases as extra K columns.

    w1: (Cmid, Cin, 3, 3) no-bias conv weight (PyTorch OIHW)
    w2: (Cout, Cmid, 1, 1) 1x1 conv weight, b2: (Cout,) bias
    Returns w1_aug (Cmid, 9*Cin+1), w2_aug (Cout, Cmid+1).
    """
    Cmid, Cin = w1.shape[0], w1.shape[1]
    Cout = w2.shape[0]
    scale = gamma / jnp.sqrt(var + _BN_EPS)                 # (Cmid,)
    w1f = w1 * scale[:, None, None, None]                   # (Cmid, Cin, 3, 3)
    b1f = beta - mean * scale                               # (Cmid,)
    # column order = (kh*3 + kw)*Cin + cin  (matches the in-kernel tap order)
    w1_mat = jnp.transpose(w1f, (0, 2, 3, 1)).reshape(Cmid, 9 * Cin)
    w1_aug = jnp.concatenate([w1_mat, b1f[:, None]], axis=1)
    w2_aug = jnp.concatenate([w2.reshape(Cout, Cmid), b2[:, None]], axis=1)
    return w1_aug.astype(jnp.float32), w2_aug.astype(jnp.float32)


# --------------------------- pure-JAX reference ------------------------------

def yolov1_head_ref(x, w1, gamma, beta, mean, var, w2, b2):
    """Unfused reference matching PyTorch eval-mode semantics (NCHW)."""
    c = lambda v: v[None, :, None, None]
    y = lax.conv_general_dilated(
        x, w1, window_strides=(1, 1), padding=((1, 1), (1, 1)),
        dimension_numbers=("NCHW", "OIHW", "NCHW"))
    y = (y - c(mean)) / jnp.sqrt(c(var) + _BN_EPS) * c(gamma) + c(beta)
    y = jnp.where(y >= 0, y, _LEAKY_SLOPE * y)
    y = lax.conv_general_dilated(
        y, w2, window_strides=(1, 1), padding=((0, 0), (0, 0)),
        dimension_numbers=("NCHW", "OIHW", "NCHW"))
    return y + c(b2)


# ----------------------------------- main ------------------------------------

if __name__ == "__main__":
    key = jax.random.PRNGKey(0)
    ks = jax.random.split(key, 8)

    N, in_c, H, W = 2, 8, 16, 16
    num_anchor, num_classes = 2, 80
    mid_c = 2 * in_c                            # convs_bridge output channels
    filters = 5 * num_anchor + num_classes      # convs_pred output channels (90)

    x = jax.random.normal(ks[0], (N, in_c, H, W), jnp.float32)
    w1 = 0.1 * jax.random.normal(ks[1], (mid_c, in_c, 3, 3), jnp.float32)
    gamma = 1.0 + 0.1 * jax.random.normal(ks[2], (mid_c,), jnp.float32)
    beta = 0.05 * jax.random.normal(ks[3], (mid_c,), jnp.float32)
    mean = 0.1 * jax.random.normal(ks[4], (mid_c,), jnp.float32)
    var = 1.0 + 0.1 * jnp.abs(jax.random.normal(ks[5], (mid_c,), jnp.float32))
    w2 = 0.1 * jax.random.normal(ks[6], (filters, mid_c, 1, 1), jnp.float32)
    b2 = 0.05 * jax.random.normal(ks[7], (filters,), jnp.float32)

    params = fold_params(w1, gamma, beta, mean, var, w2, b2)
    fwd = jax.jit(lambda inp: yolov1_head(inp, *params))
    out = jax.block_until_ready(fwd(x))

    assert out.shape == (N, filters, H, W), out.shape
    assert bool(jnp.all(jnp.isfinite(out)))

    ref = jax.block_until_ready(
        yolov1_head_ref(x, w1, gamma, beta, mean, var, w2, b2))
    max_err = float(jnp.max(jnp.abs(out - ref)))
    assert jnp.allclose(out, ref, rtol=1e-3, atol=1e-3), max_err
    print("KERNEL_OK")
</pallas_src>

<mosaic_0001>
module attributes {stable_mosaic.version = 11 : i64} {
  func.func @_yolov1_head_kernel(%arg0: i32, %arg1: memref<2x8x256xf32, #tpu.memory_space<vmem>>, %arg2: memref<16x73xf32, #tpu.memory_space<vmem>>, %arg3: memref<90x17xf32, #tpu.memory_space<vmem>>, %arg4: memref<2x90x256xf32, #tpu.memory_space<vmem>>, %arg5: memref<8x896xf32, #tpu.memory_space<vmem>>, %arg6: memref<73x512xf32, #tpu.memory_space<vmem>>, %arg7: memref<17x512xf32, #tpu.memory_space<vmem>>) attributes {dimension_semantics = [#tpu.dimension_semantics<parallel>], iteration_bounds = array<i64: 1>, scalar_prefetch = 0 : i64, scratch_operands = 3 : i64, tpu.core_type = #tpu.core_type<tc>, window_params = [{transform_indices = @transform_0, window_bounds = array<i64: 2, 8, 256>}, {pipeline_mode = #tpu.pipeline_mode<synchronous>, transform_indices = @transform_1, window_bounds = array<i64: 16, 73>}, {pipeline_mode = #tpu.pipeline_mode<synchronous>, transform_indices = @transform_2, window_bounds = array<i64: 90, 17>}, {transform_indices = @transform_3, window_bounds = array<i64: 2, 90, 256>}]} {
    %cst = arith.constant 0.000000e+00 : f32
    %0 = vector.broadcast %cst : f32 to vector<8x128xf32>
    %c0 = arith.constant 0 : index
    %c0_0 = arith.constant 0 : index
    %1 = vector.load %arg5[%c0, %c0_0] : memref<8x896xf32, #tpu.memory_space<vmem>>, vector<8x128xf32>
    tpu.vector_store %arg5[%c0, %c0_0], %0 {strides = array<i32>} : memref<8x896xf32, #tpu.memory_space<vmem>>, vector<8x128xf32>,
    %cst_1 = arith.constant 0.000000e+00 : f32
    %2 = vector.broadcast %cst_1 : f32 to vector<8x128xf32>
    %c0_2 = arith.constant 0 : index
    %c384 = arith.constant 384 : index
    %3 = vector.load %arg5[%c0_2, %c384] : memref<8x896xf32, #tpu.memory_space<vmem>>, vector<8x128xf32>
    tpu.vector_store %arg5[%c0_2, %c384], %2 {strides = array<i32>} : memref<8x896xf32, #tpu.memory_space<vmem>>, vector<8x128xf32>,
    %cst_3 = arith.constant 0.000000e+00 : f32
    %4 = vector.broadcast %cst_3 : f32 to vector<8x128xf32>
    %c0_4 = arith.constant 0 : index
    %c768 = arith.constant 768 : index
    %5 = vector.load %arg5[%c0_4, %c768] : memref<8x896xf32, #tpu.memory_space<vmem>>, vector<8x128xf32>
    tpu.vector_store %arg5[%c0_4, %c768], %4 {strides = array<i32>} : memref<8x896xf32, #tpu.memory_space<vmem>>, vector<8x128xf32>,
    %cst_5 = arith.constant 1.000000e+00 : f32
    %6 = vector.broadcast %cst_5 : f32 to vector<1x512xf32>
    %c72 = arith.constant 72 : index
    %c0_6 = arith.constant 0 : index
    %7 = vector.load %arg6[%c72, %c0_6] : memref<73x512xf32, #tpu.memory_space<vmem>>, vector<1x512xf32>
    tpu.vector_store %arg6[%c72, %c0_6], %6 {strides = array<i32>} : memref<73x512xf32, #tpu.memory_space<vmem>>, vector<1x512xf32>,
    %cst_7 = arith.constant 1.000000e+00 : f32
    %8 = vector.broadcast %cst_7 : f32 to vector<1x512xf32>
    %c16 = arith.constant 16 : index
    %c0_8 = arith.constant 0 : index
    %9 = vector.load %arg7[%c16, %c0_8] : memref<17x512xf32, #tpu.memory_space<vmem>>, vector<1x512xf32>
    tpu.vector_store %arg7[%c16, %c0_8], %8 {strides = array<i32>} : memref<17x512xf32, #tpu.memory_space<vmem>>, vector<1x512xf32>,
    %10 = tpu.iota {dimensions = array<i32: 1>} : vector<8x256xi32>
    %c15_i32 = arith.constant 15 : i32
    %11 = vector.broadcast %c15_i32 : i32 to vector<8x256xi32>
    %12 = arith.andi %10, %11 : vector<8x256xi32>
    %c1_i32 = arith.constant 1 : i32
    %13 = vector.broadcast %c1_i32 : i32 to vector<8x256xi32>
    %14 = arith.cmpi sge, %12, %13 : vector<8x256xi32>
    %c15_i32_9 = arith.constant 15 : i32
    %15 = vector.broadcast %c15_i32_9 : i32 to vector<8x256xi32>
    %16 = arith.cmpi slt, %12, %15 : vector<8x256xi32>
    %c0_10 = arith.constant 0 : index
    %c0_11 = arith.constant 0 : index
    %c0_12 = arith.constant 0 : index
    %17 = vector.load %arg1[%c0_10, %c0_11, %c0_12] : memref<2x8x256xf32, #tpu.memory_space<vmem>>, vector<1x8x256xf32>
    %18 = vector.shape_cast %17 : vector<1x8x256xf32> to vector<8x256xf32>
    %c0_13 = arith.constant 0 : index
    %c128 = arith.constant 128 : index
    %19 = vector.load %arg5[%c0_13, %c128] : memref<8x896xf32, #tpu.memory_space<vmem>>, vector<8x256xf32>
    tpu.vector_store %arg5[%c0_13, %c128], %18 {strides = array<i32>} : memref<8x896xf32, #tpu.memory_space<vmem>>, vector<8x256xf32>,
    %c1 = arith.constant 1 : index
    %c0_14 = arith.constant 0 : index
    %c0_15 = arith.constant 0 : index
    %20 = vector.load %arg1[%c1, %c0_14, %c0_15] : memref<2x8x256xf32, #tpu.memory_space<vmem>>, vector<1x8x256xf32>
    %21 = vector.shape_cast %20 : vector<1x8x256xf32> to vector<8x256xf32>
    %c0_16 = arith.constant 0 : index
    %c512 = arith.constant 512 : index
    %22 = vector.load %arg5[%c0_16, %c512] : memref<8x896xf32, #tpu.memory_space<vmem>>, vector<8x256xf32>
    tpu.vector_store %arg5[%c0_16, %c512], %21 {strides = array<i32>} : memref<8x896xf32, #tpu.memory_space<vmem>>, vector<8x256xf32>,
    %c0_17 = arith.constant 0 : index
    %c111 = arith.constant 111 : index
    %23 = vector.load %arg5[%c0_17, %c111] : memref<8x896xf32, #tpu.memory_space<vmem>>, vector<8x256xf32>
    %cst_18 = arith.constant 0.000000e+00 : f32
    %24 = vector.broadcast %cst_18 : f32 to vector<8x256xf32>
    %25 = arith.select %14, %23, %24 : vector<8x256xi1>, vector<8x256xf32>
    %c0_19 = arith.constant 0 : index
    %c0_20 = arith.constant 0 : index
    %26 = vector.load %arg6[%c0_19, %c0_20] : memref<73x512xf32, #tpu.memory_space<vmem>>, vector<8x256xf32>
    tpu.vector_store %arg6[%c0_19, %c0_20], %25 {strides = array<i32>} : memref<73x512xf32, #tpu.memory_space<vmem>>, vector<8x256xf32>,
    %c0_21 = arith.constant 0 : index
    %c495 = arith.constant 495 : index
    %27 = vector.load %arg5[%c0_21, %c495] : memref<8x896xf32, #tpu.memory_space<vmem>>, vector<8x256xf32>
    %cst_22 = arith.constant 0.000000e+00 : f32
    %28 = vector.broadcast %cst_22 : f32 to vector<8x256xf32>
    %29 = arith.select %14, %27, %28 : vector<8x256xi1>, vector<8x256xf32>
    %c0_23 = arith.constant 0 : index
    %c256 = arith.constant 256 : index
    %30 = vector.load %arg6[%c0_23, %c256] : memref<73x512xf32, #tpu.memory_space<vmem>>, vector<8x256xf32>
    tpu.vector_store %arg6[%c0_23, %c256], %29 {strides = array<i32>} : memref<73x512xf32, #tpu.memory_space<vmem>>, vector<8x256xf32>,
    %c0_24 = arith.constant 0 : index
    %c112 = arith.constant 112 : index
    %31 = vector.load %arg5[%c0_24, %c112] : memref<8x896xf32, #tpu.memory_space<vmem>>, vector<8x256xf32>
    %c8 = arith.constant 8 : index
    %c0_25 = arith.constant 0 : index
    %32 = vector.load %arg6[%c8, %c0_25] : memref<73x512xf32, #tpu.memory_space<vmem>>, vector<8x256xf32>
    tpu.vector_store %arg6[%c8, %c0_25], %31 {strides = array<i32>} : memref<73x512xf32, #tpu.memory_space<vmem>>, vector<8x256xf32>,
    %c0_26 = arith.constant 0 : index
    %c496 = arith.constant 496 : index
    %33 = vector.load %arg5[%c0_26, %c496] : memref<8x896xf32, #tpu.memory_space<vmem>>, vector<8x256xf32>
    %c8_27 = arith.constant 8 : index
    %c256_28 = arith.constant 256 : index
    %34 = vector.load %arg6[%c8_27, %c256_28] : memref<73x512xf32, #tpu.memory_space<vmem>>, vector<8x256xf32>
    tpu.vector_store %arg6[%c8_27, %c256_28], %33 {strides = array<i32>} : memref<73x512xf32, #tpu.memory_space<vmem>>, vector<8x256xf32>,
    %c0_29 = arith.constant 0 : index
    %c113 = arith.constant 113 : index
    %35 = vector.load %arg5[%c0_29, %c113] : memref<8x896xf32, #tpu.memory_space<vmem>>, vector<8x256xf32>
    %cst_30 = arith.constant 0.000000e+00 : f32
    %36 = vector.broadcast %cst_30 : f32 to vector<8x256xf32>
    %37 = arith.select %16, %35, %36 : vector<8x256xi1>, vector<8x256xf32>
    %c16_31 = arith.constant 16 : index
    %c0_32 = arith.constant 0 : index
    %38 = vector.load %arg6[%c16_31, %c0_32] : memref<73x512xf32, #tpu.memory_space<vmem>>, vector<8x256xf32>
    tpu.vector_store %arg6[%c16_31, %c0_32], %37 {strides = array<i32>} : memref<73x512xf32, #tpu.memory_space<vmem>>, vector<8x256xf32>,
    %c0_33 = arith.constant 0 : index
    %c497 = arith.constant 497 : index
    %39 = vector.load %arg5[%c0_33, %c497] : memref<8x896xf32, #tpu.memory_space<vmem>>, vector<8x256xf32>
    %cst_34 = arith.constant 0.000000e+00 : f32
    %40 = vector.broadcast %cst_34 : f32 to vector<8x256xf32>
    %41 = arith.select %16, %39, %40 : vector<8x256xi1>, vector<8x256xf32>
    %c16_35 = arith.constant 16 : index
    %c256_36 = arith.constant 256 : index
    %42 = vector.load %arg6[%c16_35, %c256_36] : memref<73x512xf32, #tpu.memory_space<vmem>>, vector<8x256xf32>
    tpu.vector_store %arg6[%c16_35, %c256_36], %41 {strides = array<i32>} : memref<73x512xf32, #tpu.memory_space<vmem>>, vector<8x256xf32>,
    %c0_37 = arith.constant 0 : index
    %c127 = arith.constant 127 : index
    %43 = vector.load %arg5[%c0_37, %c127] : memref<8x896xf32, #tpu.memory_space<vmem>>, vector<8x256xf32>
    %cst_38 = arith.constant 0.000000e+00 : f32
    %44 = vector.broadcast %cst_38 : f32 to vector<8x256xf32>
    %45 = arith.select %14, %43, %44 : vector<8x256xi1>, vector<8x256xf32>
    %c24 = arith.constant 24 : index
    %c0_39 = arith.constant 0 : index
    %46 = vector.load %arg6[%c24, %c0_39] : memref<73x512xf32, #tpu.memory_space<vmem>>, vector<8x256xf32>
    tpu.vector_store %arg6[%c24, %c0_39], %45 {strides = array<i32>} : memref<73x512xf32, #tpu.memory_space<vmem>>, vector<8x256xf32>,
    %c0_40 = arith.constant 0 : index
    %c511 = arith.constant 511 : index
    %47 = vector.load %arg5[%c0_40, %c511] : memref<8x896xf32, #tpu.memory_space<vmem>>, vector<8x256xf32>
    %cst_41 = arith.constant 0.000000e+00 : f32
    %48 = vector.broadcast %cst_41 : f32 to vector<8x256xf32>
    %49 = arith.select %14, %47, %48 : vector<8x256xi1>, vector<8x256xf32>
    %c24_42 = arith.constant 24 : index
    %c256_43 = arith.constant 256 : index
    %50 = vector.load %arg6[%c24_42, %c256_43] : memref<73x512xf32, #tpu.memory_space<vmem>>, vector<8x256xf32>
    tpu.vector_store %arg6[%c24_42, %c256_43], %49 {strides = array<i32>} : memref<73x512xf32, #tpu.memory_space<vmem>>, vector<8x256xf32>,
    %c0_44 = arith.constant 0 : index
    %c128_45 = arith.constant 128 : index
    %51 = vector.load %arg5[%c0_44, %c128_45] : memref<8x896xf32, #tpu.memory_space<vmem>>, vector<8x256xf32>
    %c32 = arith.constant 32 : index
    %c0_46 = arith.constant 0 : index
    %52 = vector.load %arg6[%c32, %c0_46] : memref<73x512xf32, #tpu.memory_space<vmem>>, vector<8x256xf32>
    tpu.vector_store %arg6[%c32, %c0_46], %51 {strides = array<i32>} : memref<73x512xf32, #tpu.memory_space<vmem>>, vector<8x256xf32>,
    %c0_47 = arith.constant 0 : index
    %c512_48 = arith.constant 512 : index
    %53 = vector.load %arg5[%c0_47, %c512_48] : memref<8x896xf32, #tpu.memory_space<vmem>>, vector<8x256xf32>
    %c32_49 = arith.constant 32 : index
    %c256_50 = arith.constant 256 : index
    %54 = vector.load %arg6[%c32_49, %c256_50] : memref<73x512xf32, #tpu.memory_space<vmem>>, vector<8x256xf32>
    tpu.vector_store %arg6[%c32_49, %c256_50], %53 {strides = array<i32>} : memref<73x512xf32, #tpu.memory_space<vmem>>, vector<8x256xf32>,
    %c0_51 = arith.constant 0 : index
    %c129 = arith.constant 129 : index
    %55 = vector.load %arg5[%c0_51, %c129] : memref<8x896xf32, #tpu.memory_space<vmem>>, vector<8x256xf32>
    %cst_52 = arith.constant 0.000000e+00 : f32
    %56 = vector.broadcast %cst_52 : f32 to vector<8x256xf32>
    %57 = arith.select %16, %55, %56 : vector<8x256xi1>, vector<8x256xf32>
    %c40 = arith.constant 40 : index
    %c0_53 = arith.constant 0 : index
    %58 = vector.load %arg6[%c40, %c0_53] : memref<73x512xf32, #tpu.memory_space<vmem>>, vector<8x256xf32>
    tpu.vector_store %arg6[%c40, %c0_53], %57 {strides = array<i32>} : memref<73x512xf32, #tpu.memory_space<vmem>>, vector<8x256xf32>,
    %c0_54 = arith.constant 0 : index
    %c513 = arith.constant 513 : index
    %59 = vector.load %arg5[%c0_54, %c513] : memref<8x896xf32, #tpu.memory_space<vmem>>, vector<8x256xf32>
    %cst_55 = arith.constant 0.000000e+00 : f32
    %60 = vector.broadcast %cst_55 : f32 to vector<8x256xf32>
    %61 = arith.select %16, %59, %60 : vector<8x256xi1>, vector<8x256xf32>
    %c40_56 = arith.constant 40 : index
    %c256_57 = arith.constant 256 : index
    %62 = vector.load %arg6[%c40_56, %c256_57] : memref<73x512xf32, #tpu.memory_space<vmem>>, vector<8x256xf32>
    tpu.vector_store %arg6[%c40_56, %c256_57], %61 {strides = array<i32>} : memref<73x512xf32, #tpu.memory_space<vmem>>, vector<8x256xf32>,
    %c0_58 = arith.constant 0 : index
    %c143 = arith.constant 143 : index
    %63 = vector.load %arg5[%c0_58, %c143] : memref<8x896xf32, #tpu.memory_space<vmem>>, vector<8x256xf32>
    %cst_59 = arith.constant 0.000000e+00 : f32
    %64 = vector.broadcast %cst_59 : f32 to vector<8x256xf32>
    %65 = arith.select %14, %63, %64 : vector<8x256xi1>, vector<8x256xf32>
    %c48 = arith.constant 48 : index
    %c0_60 = arith.constant 0 : index
    %66 = vector.load %arg6[%c48, %c0_60] : memref<73x512xf32, #tpu.memory_space<vmem>>, vector<8x256xf32>
    tpu.vector_store %arg6[%c48, %c0_60], %65 {strides = array<i32>} : memref<73x512xf32, #tpu.memory_space<vmem>>, vector<8x256xf32>,
    %c0_61 = arith.constant 0 : index
    %c527 = arith.constant 527 : index
    %67 = vector.load %arg5[%c0_61, %c527] : memref<8x896xf32, #tpu.memory_space<vmem>>, vector<8x256xf32>
    %cst_62 = arith.constant 0.000000e+00 : f32
    %68 = vector.broadcast %cst_62 : f32 to vector<8x256xf32>
    %69 = arith.select %14, %67, %68 : vector<8x256xi1>, vector<8x256xf32>
    %c48_63 = arith.constant 48 : index
    %c256_64 = arith.constant 256 : index
    %70 = vector.load %arg6[%c48_63, %c256_64] : memref<73x512xf32, #tpu.memory_space<vmem>>, vector<8x256xf32>
    tpu.vector_store %arg6[%c48_63, %c256_64], %69 {strides = array<i32>} : memref<73x512xf32, #tpu.memory_space<vmem>>, vector<8x256xf32>,
    %c0_65 = arith.constant 0 : index
    %c144 = arith.constant 144 : index
    %71 = vector.load %arg5[%c0_65, %c144] : memref<8x896xf32, #tpu.memory_space<vmem>>, vector<8x256xf32>
    %c56 = arith.constant 56 : index
    %c0_66 = arith.constant 0 : index
    %72 = vector.load %arg6[%c56, %c0_66] : memref<73x512xf32, #tpu.memory_space<vmem>>, vector<8x256xf32>
    tpu.vector_store %arg6[%c56, %c0_66], %71 {strides = array<i32>} : memref<73x512xf32, #tpu.memory_space<vmem>>, vector<8x256xf32>,
    %c0_67 = arith.constant 0 : index
    %c528 = arith.constant 528 : index
    %73 = vector.load %arg5[%c0_67, %c528] : memref<8x896xf32, #tpu.memory_space<vmem>>, vector<8x256xf32>
    %c56_68 = arith.constant 56 : index
    %c256_69 = arith.constant 256 : index
    %74 = vector.load %arg6[%c56_68, %c256_69] : memref<73x512xf32, #tpu.memory_space<vmem>>, vector<8x256xf32>
    tpu.vector_store %arg6[%c56_68, %c256_69], %73 {strides = array<i32>} : memref<73x512xf32, #tpu.memory_space<vmem>>, vector<8x256xf32>,
    %c0_70 = arith.constant 0 : index
    %c145 = arith.constant 145 : index
    %75 = vector.load %arg5[%c0_70, %c145] : memref<8x896xf32, #tpu.memory_space<vmem>>, vector<8x256xf32>
    %cst_71 = arith.constant 0.000000e+00 : f32
    %76 = vector.broadcast %cst_71 : f32 to vector<8x256xf32>
    %77 = arith.select %16, %75, %76 : vector<8x256xi1>, vector<8x256xf32>
    %c64 = arith.constant 64 : index
    %c0_72 = arith.constant 0 : index
    %78 = vector.load %arg6[%c64, %c0_72] : memref<73x512xf32, #tpu.memory_space<vmem>>, vector<8x256xf32>
    tpu.vector_store %arg6[%c64, %c0_72], %77 {strides = array<i32>} : memref<73x512xf32, #tpu.memory_space<vmem>>, vector<8x256xf32>,
    %c0_73 = arith.constant 0 : index
    %c529 = arith.constant 529 : index
    %79 = vector.load %arg5[%c0_73, %c529] : memref<8x896xf32, #tpu.memory_space<vmem>>, vector<8x256xf32>
    %cst_74 = arith.constant 0.000000e+00 : f32
    %80 = vector.broadcast %cst_74 : f32 to vector<8x256xf32>
    %81 = arith.select %16, %79, %80 : vector<8x256xi1>, vector<8x256xf32>
    %c64_75 = arith.constant 64 : index
    %c256_76 = arith.constant 256 : index
    %82 = vector.load %arg6[%c64_75, %c256_76] : memref<73x512xf32, #tpu.memory_space<vmem>>, vector<8x256xf32>
    tpu.vector_store %arg6[%c64_75, %c256_76], %81 {strides = array<i32>} : memref<73x512xf32, #tpu.memory_space<vmem>>, vector<8x256xf32>,
    %c0_77 = arith.constant 0 : index
    %c0_78 = arith.constant 0 : index
    %83 = vector.load %arg2[%c0_77, %c0_78] : memref<16x73xf32, #tpu.memory_space<vmem>>, vector<16x73xf32>
    %c0_79 = arith.constant 0 : index
    %c0_80 = arith.constant 0 : index
    %84 = vector.load %arg6[%c0_79, %c0_80] : memref<73x512xf32, #tpu.memory_space<vmem>>, vector<73x512xf32>
    %cst_81 = arith.constant dense<0.000000e+00> : vector<16x512xf32>
    %85 = tpu.matmul %83, %84, %cst_81 {dimension_numbers = #tpu.dot_dimension_numbers<[1], [0], [0], [1], [0, 0, 1, 1], [], []>} : vector<16x73xf32>, vector<73x512xf32>, vector<16x512xf32> -> vector<16x512xf32>
    %cst_82 = arith.constant 1.000000e-01 : f32
    %86 = vector.broadcast %cst_82 : f32 to vector<16x512xf32>
    %87 = arith.mulf %86, %85 : vector<16x512xf32>
    %88 = arith.maximumf %85, %87 : vector<16x512xf32>
    %c0_83 = arith.constant 0 : index
    %c0_84 = arith.constant 0 : index
    %89 = vector.load %arg7[%c0_83, %c0_84] : memref<17x512xf32, #tpu.memory_space<vmem>>, vector<16x512xf32>
    tpu.vector_store %arg7[%c0_83, %c0_84], %88 {strides = array<i32>} : memref<17x512xf32, #tpu.memory_space<vmem>>, vector<16x512xf32>,
    %c0_85 = arith.constant 0 : index
    %c0_86 = arith.constant 0 : index
    %90 = vector.load %arg3[%c0_85, %c0_86] : memref<90x17xf32, #tpu.memory_space<vmem>>, vector<90x17xf32>
    %c0_87 = arith.constant 0 : index
    %c0_88 = arith.constant 0 : index
    %91 = vector.load %arg7[%c0_87, %c0_88] : memref<17x512xf32, #tpu.memory_space<vmem>>, vector<17x256xf32>
    %cst_89 = arith.constant dense<0.000000e+00> : vector<90x256xf32>
    %92 = tpu.matmul %90, %91, %cst_89 {dimension_numbers = #tpu.dot_dimension_numbers<[1], [0], [0], [1], [0, 0, 1, 1], [], []>} : vector<90x17xf32>, vector<17x256xf32>, vector<90x256xf32> -> vector<90x256xf32>
    %c0_90 = arith.constant 0 : index
    %c0_91 = arith.constant 0 : index
    %c0_92 = arith.constant 0 : index
    %93 = vector.load %arg4[%c0_90, %c0_91, %c0_92] : memref<2x90x256xf32, #tpu.memory_space<vmem>>, vector<1x90x256xf32>
    %94 = vector.shape_cast %93 : vector<1x90x256xf32> to vector<90x256xf32>
    %95 = vector.shape_cast %92 : vector<90x256xf32> to vector<1x90x256xf32>
    tpu.vector_store %arg4[%c0_90, %c0_91, %c0_92], %95 {strides = array<i32>} : memref<2x90x256xf32, #tpu.memory_space<vmem>>, vector<1x90x256xf32>,
    %c0_93 = arith.constant 0 : index
    %c0_94 = arith.constant 0 : index
    %96 = vector.load %arg3[%c0_93, %c0_94] : memref<90x17xf32, #tpu.memory_space<vmem>>, vector<90x17xf32>
    %c0_95 = arith.constant 0 : index
    %c256_96 = arith.constant 256 : index
    %97 = vector.load %arg7[%c0_95, %c256_96] : memref<17x512xf32, #tpu.memory_space<vmem>>, vector<17x256xf32>
    %cst_97 = arith.constant dense<0.000000e+00> : vector<90x256xf32>
    %98 = tpu.matmul %96, %97, %cst_97 {dimension_numbers = #tpu.dot_dimension_numbers<[1], [0], [0], [1], [0, 0, 1, 1], [], []>} : vector<90x17xf32>, vector<17x256xf32>, vector<90x256xf32> -> vector<90x256xf32>
    %c1_98 = arith.constant 1 : index
    %c0_99 = arith.constant 0 : index
    %c0_100 = arith.constant 0 : index
    %99 = vector.load %arg4[%c1_98, %c0_99, %c0_100] : memref<2x90x256xf32, #tpu.memory_space<vmem>>, vector<1x90x256xf32>
    %100 = vector.shape_cast %99 : vector<1x90x256xf32> to vector<90x256xf32>
    %101 = vector.shape_cast %98 : vector<90x256xf32> to vector<1x90x256xf32>
    tpu.vector_store %arg4[%c1_98, %c0_99, %c0_100], %101 {strides = array<i32>} : memref<2x90x256xf32, #tpu.memory_space<vmem>>, vector<1x90x256xf32>,
    return
  }
  func.func @transform_0(%arg0: i32) -> (i32, i32, i32) {
    %c0_i32 = arith.constant 0 : i32
    %c0_i32_0 = arith.constant 0 : i32
    %c0_i32_1 = arith.constant 0 : i32
    return %arg0, %c0_i32, %c0_i32_0 : i32, i32, i32
  }
  func.func @transform_1(%arg0: i32) -> (i32, i32) {
    %c0_i32 = arith.constant 0 : i32
    %c0_i32_0 = arith.constant 0 : i32
    %c0_i32_1 = arith.constant 0 : i32
    return %c0_i32, %c0_i32_0 : i32, i32
  }
  func.func @transform_2(%arg0: i32) -> (i32, i32) {
    %c0_i32 = arith.constant 0 : i32
    %c0_i32_0 = arith.constant 0 : i32
    %c0_i32_1 = arith.constant 0 : i32
    return %c0_i32, %c0_i32_0 : i32, i32
  }
  func.func @transform_3(%arg0: i32) -> (i32, i32, i32) {
    %c0_i32 = arith.constant 0 : i32
    %c0_i32_0 = arith.constant 0 : i32
    %c0_i32_1 = arith.constant 0 : i32
    return %arg0, %c0_i32, %c0_i32_0 : i32, i32, i32
  }
}

</mosaic_0001>

<bundles_post_ra>
// kernel: _lambda_.1
= control target key start
LH: loop header
LB: loop body
LE: loop exit
PB: predicated region body
PF: predicated region fallthrough
CT: control target
= control target key end

     0   :  { %v17_v0 = vlaneseq  ;;  %v1196_v4 = vmov 0.0   ;;  %s1197_s18 = smov 111   ;;  %v1198_v6 = vmov 1.0   ;;  %vm422_vm1 = vcmask 1040384   ;;  %s1199_s21 = smov 112   ;;  %s1629_s0 = inlined_call_operand.vmem [shape: f32[2,8,256], index: 0, kind: input, shape index: {}]   ;;  %s1630_s1 = inlined_call_operand.vmem [shape: f32[16,73], index: 1, kind: input, shape index: {}]   ;;  %s1631_s2 = inlined_call_operand.vmem [shape: f32[90,17], index: 2, kind: input, shape index: {}]   ;;  %s1632_s3 = inlined_call_operand.vmem [shape: f32[2,90,256], index: 3, kind: output, shape index: {}]  }
   0x1   :  { %v1229_v1 = vld [vmem:[%s1629_s0 + $0x18] sm:$0xff]  ;;  %v1234_v2 = vld [vmem:[%s1629_s0 + $0x8] sm:$0xff]  ;;  %v1239_v3 = vld [vmem:[%s1629_s0] sm:$0xff]  ;;  %499 = vmatprep.mubr.f32.mxu0 %v1196_v4  ;;  %576 = vmatprep.mubr.f32.mxu1 %v1196_v4  ;;  %s1201_s22 = smov 127   ;;  %s1202_s23 = smov 1   ;;  %vm344_vm2 = vcmask 908288  }
   0x2   :  { %361 = vrot.lane.b32.xlu1 %v1229_v1, %s1197_s18  ;;  %340 = vrot.lane.b32.xlu0 %v1234_v2, %s1197_s18  ;;  %v1247_v5 = vld [vmem:[%s1629_s0 + $0x10] sm:$0xff]  ;;  %vm19_vm0 = vcmp.lt.s32.totalorder %v17_v0, 512  ;;  %s1200_s0 = smov 113   ;;  %s1203_s24 = smov 15   ;;  %v28_v11 = vand.u32 127, %v17_v0  ;;  %vm307_vm5 = vcmask 916480  }
   0x3   :  { %22 = vst.msk [vmem:[#allocation3 + $0x120] ss:$8 sm:$0xf] %vm19_vm0, %v1198_v6  ;;  %25 = vst.msk [vmem:[#allocation4 + $0x40] ss:$8 sm:$0xf] %vm19_vm0, %v1198_v6 }
   0x4   :  { %s1204_s25 = smov 16   ;;  %s1205_s26 = smov 17   ;;  %v29_v12 = vadd.s32 128, %v28_v11  ;;  %v30_v13 = vand.u32 15, %v28_v11  ;;  %vm266_vm6 = vcmask 924672   ;;  %vm225_vm9 = vcmask 1039360  }
   0x5   :  { %vm176_vm10 = vcmask 7168   ;;  %vm135_vm11 = vcmask 121856   ;;  %vm98_vm12 = vcmask 130048   ;;  %vm57_vm13 = vcmask 138240  }
   0x6   :  { %1133 = vrot.lane.b32.xlu0 %v1196_v4, %s1197_s18  ;;  %338 = vrot.lane.b32.xlu1 %v1239_v3, %s1197_s18  ;;  %v31_v16 = vand.u32 15, %v29_v12  ;;  %vm1294_vm3 = vcmp.lt.s32.totalorder %v30_v13, 15  ;;  %vm1319_vm8 = vcmp.ge.s32.totalorder %v30_v13, 1  ;;  %vm415_vm14 = vcmask 596992  }
   0x8   :  { %vm1298_vm4 = vcmp.lt.s32.totalorder %v31_v16, 15  ;;  %vm1312_vm7 = vcmp.ge.s32.totalorder %v31_v16, 1 }
   0xa   :  { %359 = vrot.lane.b32.xlu0 %v1247_v5, %s1197_s18  ;;  %303 = vrot.lane.b32.xlu1 %v1234_v2, %s1199_s21  ;;  %v412_v7 = vld [vmem:[#allocation3 + $0x128] sm:$0x1]  ;;  %v414_v8 = vld [vmem:[#allocation3 + $0x138] sm:$0x1]  ;;  %v411_v9 = vld [vmem:[#allocation3 + $0x120] sm:$0x1] }
   0xb   :  { %1062 = vmatprep.subr.msk.mxu0 %vm422_vm1, %v412_v7  ;;  %1066 = vmatprep.subr.msk.mxu1 %vm422_vm1, %v414_v8  ;;  %v413_v10 = vld [vmem:[#allocation3 + $0x130] sm:$0x1]  ;;  %v630_v39 = vld [vmem:[#allocation4 + $0x48] sm:$0x1]  ;;  %v629_v45 = vld [vmem:[#allocation4 + $0x40] sm:$0x1] }
   0xc   :  { %1063 = vmatpush1.msk.msra.mxu0 %vm422_vm1, %v411_v9  ;;  %1067 = vmatpush1.msk.msra.mxu1 %vm422_vm1, %v413_v10 }
   0xe   :  { %1138 = vrot.lane.b32.xlu0 %v1196_v4, %s1199_s21  ;;  %322 = vrot.lane.b32.xlu1 %v1229_v1, %s1199_s21 }
  0x12   :  { %262 = vrot.lane.b32.xlu0 %v1234_v2, %s1200_s0  ;;  %1143 = vrot.lane.b32.xlu1 %v1196_v4, %s1200_s0 }
  0x16   :  { %283 = vrot.lane.b32.xlu0 %v1229_v1, %s1200_s0  ;;  %301 = vrot.lane.b32.xlu1 %v1239_v3, %s1199_s21 }
  0x1a   :  { %320 = vrot.lane.b32.xlu0 %v1247_v5, %s1199_s21  ;;  %260 = vrot.lane.b32.xlu1 %v1239_v3, %s1200_s0 }
  0x1e   :  { %281 = vrot.lane.b32.xlu0 %v1247_v5, %s1200_s0  ;;  %221 = vrot.lane.b32.xlu1 %v1234_v2, %s1201_s22 }
  0x22   :  { %1148 = vrot.lane.b32.xlu0 %v1196_v4, %s1201_s22  ;;  %242 = vrot.lane.b32.xlu1 %v1229_v1, %s1201_s22 }
  0x26   :  { %219 = vrot.lane.b32.xlu0 %v1239_v3, %s1201_s22  ;;  %240 = vrot.lane.b32.xlu1 %v1247_v5, %s1201_s22 }
  0x2a   :  { %172 = vrot.lane.b32.xlu0 %v1239_v3, %s1202_s23  ;;  %174 = vrot.lane.b32.xlu1 %v1234_v2, %s1202_s23 }
  0x2e   :  { %193 = vrot.lane.b32.xlu0 %v1247_v5, %s1202_s23  ;;  %195 = vrot.lane.b32.xlu1 %v1229_v1, %s1202_s23 }
  0x32   :  { %1153 = vrot.lane.b32.xlu0 %v1196_v4, %s1202_s23  ;;  %131 = vrot.lane.b32.xlu1 %v1239_v3, %s1203_s24 }
  0x36   :  { %133 = vrot.lane.b32.xlu0 %v1234_v2, %s1203_s24  ;;  %152 = vrot.lane.b32.xlu1 %v1247_v5, %s1203_s24 }
  0x3a   :  { %154 = vrot.lane.b32.xlu0 %v1229_v1, %s1203_s24  ;;  %1158 = vrot.lane.b32.xlu1 %v1196_v4, %s1203_s24 }
  0x3e   :  { %94 = vrot.lane.b32.xlu0 %v1239_v3, %s1204_s25  ;;  %96 = vrot.lane.b32.xlu1 %v1234_v2, %s1204_s25 }
  0x42   :  { %113 = vrot.lane.b32.xlu0 %v1247_v5, %s1204_s25  ;;  %115 = vrot.lane.b32.xlu1 %v1229_v1, %s1204_s25 }
  0x46   :  { %53 = vrot.lane.b32.xlu0 %v1239_v3, %s1205_s26  ;;  %55 = vrot.lane.b32.xlu1 %v1234_v2, %s1205_s26 }
  0x4a   :  { %74 = vrot.lane.b32.xlu0 %v1247_v5, %s1205_s26  ;;  %76 = vrot.lane.b32.xlu1 %v1229_v1, %s1205_s26 }
  0x4e   :  { %1163 = vrot.lane.b32.xlu0 %v1196_v4, %s1204_s25  ;;  %1168 = vrot.lane.b32.xlu1 %v1196_v4, %s1205_s26 }
  0x74   :  { %v362_v14 = vpop.permute.xlu1 %361  ;;  %v341_v15 = vpop.permute.xlu0 %340 }
  0x78   :  { %v1134_v18 = vpop.permute.xlu0 %1133  ;;  %v339_v19 = vpop.permute.xlu1 %338 }
  0x79   :  { %v1136_v20 = vunpack.i.h.bf16 %v1134_v18  ;;  %v1135_v21 = vunpack.i.l.bf16 %v1134_v18  ;;  %v345_v23 = vsel %vm344_vm2, %v339_v19, %v341_v15 }
  0x7b   :  { %v346_v24 = vsel %vm344_vm2, %v341_v15, %v1135_v21  ;;  %v366_v25 = vsel %vm344_vm2, %v362_v14, %v1136_v20 }
  0x7c   :  { %v360_v26 = vpop.permute.xlu0 %359  ;;  %v304_v27 = vpop.permute.xlu1 %303  ;;  %1172 = vmatprep.subr.msk.mxu0 %vm1298_vm4, %v346_v24  ;;  %1173 = vmatprep.subr.msk.mxu1 %vm1298_vm4, %v366_v25 }
  0x7d   :  { %v365_v28 = vsel %vm344_vm2, %v360_v26, %v362_v14  ;;  %1174 = vmatpush1.msk.msra.mxu0 %vm1294_vm3, %v345_v23 }
  0x7e   :  { %1175 = vmatpush1.msk.msra.mxu1 %vm1294_vm3, %v365_v28 }
  0x80   :  { %v1139_v29 = vpop.permute.xlu0 %1138  ;;  %v323_v30 = vpop.permute.xlu1 %322 }
  0x81   :  { %v1141_v31 = vunpack.i.h.bf16 %v1139_v29  ;;  %v1140_v32 = vunpack.i.l.bf16 %v1139_v29 }
  0x83   :  { %v309_v33 = vsel %vm307_vm5, %v304_v27, %v1140_v32  ;;  %v327_v34 = vsel %vm307_vm5, %v323_v30, %v1141_v31 }
  0x84   :  { %v263_v35 = vpop.permute.xlu0 %262  ;;  %v1144_v36 = vpop.permute.xlu1 %1143  ;;  %451 = vmatprep.subr.mxu0 %v309_v33  ;;  %528 = vmatprep.subr.mxu1 %v327_v34 }
  0x85   :  { %v1146_v37 = vunpack.i.h.bf16 %v1144_v36  ;;  %v1145_v38 = vunpack.i.l.bf16 %v1144_v36 }
  0x87   :  { %v268_v40 = vsel %vm266_vm6, %v263_v35, %v1145_v38 }
  0x88   :  { %v284_v41 = vpop.permute.xlu0 %283  ;;  %v302_v42 = vpop.permute.xlu1 %301 }
  0x89   :  { %v288_v43 = vsel %vm266_vm6, %v284_v41, %v1146_v37  ;;  %v308_v44 = vsel %vm307_vm5, %v302_v42, %v304_v27 }
  0x8a   :  { %452 = vmatpush1.msra.mxu0 %v308_v44 }
  0x8b   :  { %1176 = vmatprep.subr.msk.mxu0 %vm1312_vm7, %v268_v40 }
  0x8c   :  { %v321_v46 = vpop.permute.xlu0 %320  ;;  %v261_v47 = vpop.permute.xlu1 %260 }
  0x8d   :  { %v326_v48 = vsel %vm307_vm5, %v321_v46, %v323_v30  ;;  %v267_v49 = vsel %vm266_vm6, %v261_v47, %v263_v35  ;;  %v373_v46 = vld [vmem:[%s1630_s1] sm:$0xff]  ;;  %v374_v47 = vld [vmem:[%s1630_s1 + $0x8] sm:$0xff] }
  0x8e   :  { %529 = vmatpush1.msra.mxu1 %v326_v48  ;;  %1177 = vmatpush1.msk.msra.mxu0 %vm1319_vm8, %v267_v49  ;;  %v851_v48 = vld [vmem:[#allocation4 + $0x58] sm:$0x1]  ;;  %v850_v49 = vld [vmem:[#allocation4 + $0x50] sm:$0x1] }
  0x8f   :  { %1178 = vmatprep.subr.msk.mxu1 %vm1312_vm7, %v288_v43 }
  0x90   :  { %v282_v50 = vpop.permute.xlu0 %281  ;;  %v222_v51 = vpop.permute.xlu1 %221 }
  0x91   :  { %v287_v52 = vsel %vm266_vm6, %v282_v50, %v284_v41 }
  0x92   :  { %1179 = vmatpush1.msk.msra.mxu1 %vm1319_vm8, %v287_v52 }
  0x94   :  { %v1149_v53 = vpop.permute.xlu0 %1148  ;;  %v243_v54 = vpop.permute.xlu1 %242 }
  0x95   :  { %v1151_v55 = vunpack.i.h.bf16 %v1149_v53  ;;  %v1150_v56 = vunpack.i.l.bf16 %v1149_v53 }
  0x97   :  { %v227_v57 = vsel %vm225_vm9, %v222_v51, %v1150_v56  ;;  %v247_v58 = vsel %vm225_vm9, %v243_v54, %v1151_v55 }
  0x98   :  { %v220_v59 = vpop.permute.xlu0 %219  ;;  %v241_v60 = vpop.permute.xlu1 %240  ;;  %1180 = vmatprep.subr.msk.mxu0 %vm1298_vm4, %v227_v57  ;;  %1181 = vmatprep.subr.msk.mxu1 %vm1298_vm4, %v247_v58 }
  0x99   :  { %v226_v61 = vsel %vm225_vm9, %v220_v59, %v222_v51  ;;  %v246_v62 = vsel %vm225_vm9, %v241_v60, %v243_v54 }
  0x9a   :  { %1182 = vmatpush1.msk.msra.mxu0 %vm1294_vm3, %v226_v61  ;;  %1183 = vmatpush1.msk.msra.mxu1 %vm1294_vm3, %v246_v62 }
  0x9b   :  { %457 = vmatprep.subr.mxu0 %v1234_v2  ;;  %534 = vmatprep.subr.mxu1 %v1229_v1 }
  0x9c   :  { %v173_v63 = vpop.permute.xlu0 %172  ;;  %v175_v0 = vpop.permute.xlu1 %174  ;;  %458 = vmatpush1.msra.mxu0 %v1239_v3  ;;  %535 = vmatpush1.msra.mxu1 %v1247_v5 }
  0x9d   :  { %v178_v6 = vsel %vm176_vm10, %v173_v63, %v175_v0 }
  0x9e   :  { %1184 = vmatprep.subr.msk.mxu0 %vm1312_vm7, %v178_v6 }
  0xa0   :  { %v194_v7 = vpop.permute.xlu0 %193  ;;  %v196_v8 = vpop.permute.xlu1 %195 }
  0xa1   :  { %v198_v9 = vsel %vm176_vm10, %v194_v7, %v196_v8 }
  0xa2   :  { %1185 = vmatprep.subr.msk.mxu1 %vm1312_vm7, %v198_v9 }
  0xa4   :  { %v1154_v10 = vpop.permute.xlu0 %1153  ;;  %v132_v2 = vpop.permute.xlu1 %131 }
  0xa5   :  { %v1156_v11 = vunpack.i.h.bf16 %v1154_v10  ;;  %v1155_v1 = vunpack.i.l.bf16 %v1154_v10 }
  0xa7   :  { %v197_v12 = vsel %vm176_vm10, %v1156_v11, %v194_v7  ;;  %v177_v3 = vsel %vm176_vm10, %v1155_v1, %v173_v63 }
  0xa8   :  { %v134_v5 = vpop.permute.xlu0 %133  ;;  %v153_v13 = vpop.permute.xlu1 %152  ;;  %1186 = vmatpush1.msk.msra.mxu0 %vm1319_vm8, %v177_v3  ;;  %1187 = vmatpush1.msk.msra.mxu1 %vm1319_vm8, %v197_v12  ;;  %v613_v3 = vld [vmem:[%s1631_s2] sm:$0xff] }
  0xa9   :  { %v137_v14 = vsel %vm135_vm11, %v132_v2, %v134_v5  ;;  %v614_v5 = vld [vmem:[%s1631_s2 + $0x8] sm:$0xff] }
  0xaa   :  { %1188 = vmatprep.subr.msk.mxu0 %vm1298_vm4, %v137_v14  ;;  %v616_v14 = vld [vmem:[%s1631_s2 + $0x18] sm:$0xff] }
  0xac   :  { %v155_v15 = vpop.permute.xlu0 %154  ;;  %v1159_v16 = vpop.permute.xlu1 %1158 }
  0xad   :  { %v157_v18 = vsel %vm135_vm11, %v153_v13, %v155_v15  ;;  %v1161_v19 = vunpack.i.h.bf16 %v1159_v16  ;;  %v1160_v20 = vunpack.i.l.bf16 %v1159_v16  ;;  %v617_v15 = vld [vmem:[%s1631_s2 + $0x20] sm:$0xff]  ;;  %v618_v16 = vld [vmem:[%s1631_s2 + $0x28] sm:$0xff] }
  0xae   :  { %1189 = vmatprep.subr.msk.mxu1 %vm1298_vm4, %v157_v18  ;;  %v619_v18 = vld [vmem:[%s1631_s2 + $0x30] sm:$0xff] }
  0xaf   :  { %v156_v21 = vsel %vm135_vm11, %v1161_v19, %v153_v13  ;;  %v136_v23 = vsel %vm135_vm11, %v1160_v20, %v132_v2  ;;  %v615_v13 = vld [vmem:[%s1631_s2 + $0x10] sm:$0xff]  ;;  %v620_v19 = vld [vmem:[%s1631_s2 + $0x38] sm:$0xff]  ;;  %v621_v20 = vld [vmem:[%s1631_s2 + $0x40] sm:$0xff] }
  0xb0   :  { %v95_v24 = vpop.permute.xlu0 %94  ;;  %v97_v25 = vpop.permute.xlu1 %96  ;;  %1190 = vmatpush1.msk.msra.mxu0 %vm1294_vm3, %v136_v23  ;;  %1191 = vmatpush1.msk.msra.mxu1 %vm1294_vm3, %v156_v21  ;;  %v622_v21 = vld [vmem:[%s1631_s2 + $0x48] sm:$0xff]  ;;  %v623_v23 = vld [vmem:[%s1631_s2 + $0x50] sm:$0xff] }
  0xb1   :  { %v100_v26 = vsel %vm98_vm12, %v95_v24, %v97_v25  ;;  %v845_v25 = vld [vmem:[%s1631_s2 + $0x58] sm:$0x3] }
  0xb2   :  { %463 = vmatprep.subr.mxu0 %v100_v26 }
  0xb4   :  { %v114_v27 = vpop.permute.xlu0 %113  ;;  %v116_v28 = vpop.permute.xlu1 %115 }
  0xb5   :  { %v118_v29 = vsel %vm98_vm12, %v114_v27, %v116_v28 }
  0xb6   :  { %540 = vmatprep.subr.mxu1 %v118_v29 }
  0xb8   :  { %v54_v30 = vpop.permute.xlu0 %53  ;;  %v56_v22 = vpop.permute.xlu1 %55 }
  0xb9   :  { %v59_v31 = vsel %vm57_vm13, %v54_v30, %v56_v22 }
  0xbc   :  { %v75_v32 = vpop.permute.xlu0 %74  ;;  %v77_v33 = vpop.permute.xlu1 %76 }
  0xbd   :  { %v79_v34 = vsel %vm57_vm13, %v75_v32, %v77_v33 }
  0xc0   :  { %v1164_v35 = vpop.permute.xlu0 %1163  ;;  %v1169_v36 = vpop.permute.xlu1 %1168 }
  0xc1   :  { %v1166_v37 = vunpack.i.h.bf16 %v1164_v35  ;;  %v1165_v17 = vunpack.i.l.bf16 %v1164_v35  ;;  %v1171_v38 = vunpack.i.h.bf16 %v1169_v36  ;;  %v1170_v40 = vunpack.i.l.bf16 %v1169_v36 }
  0xc3   :  { %v117_v41 = vsel %vm98_vm12, %v1166_v37, %v114_v27  ;;  %v99_v42 = vsel %vm98_vm12, %v1165_v17, %v95_v24  ;;  %v78_v43 = vsel %vm57_vm13, %v1171_v38, %v75_v32  ;;  %v58_v44 = vsel %vm57_vm13, %v1170_v40, %v54_v30  ;;  %v624_v24 = vld [vmem:[%s1631_s2 + $0x58] sm:$0x3] }
  0xc4   :  { %464 = vmatpush1.msra.mxu0 %v99_v42  ;;  %541 = vmatpush1.msra.mxu1 %v117_v41 }
  0xc5   :  { %1192 = vmatprep.subr.msk.mxu0 %vm1312_vm7, %v59_v31  ;;  %1193 = vmatprep.subr.msk.mxu1 %vm1312_vm7, %v79_v34 }
  0xc6   :  { %1194 = vmatpush1.msk.msra.mxu0 %vm1319_vm8, %v58_v44  ;;  %1195 = vmatpush1.msk.msra.mxu1 %vm1319_vm8, %v78_v43 }
  0xc7   :  { %1064 = vmatmul.mubr.msk.f32.vlgmr.msra.gmra.mxu0 %vm415_vm14, %v373_v46  ;;  %1068 = vmatmul.mubr.msk.f32.vlgmr.msra.gmra.mxu1 %vm415_vm14, %v373_v46 }
  0xc8   :  { %505 = vmatprep.mubr.f32.mxu0 %v1196_v4  ;;  %582 = vmatprep.mubr.f32.mxu1 %v1196_v4 }
  0xc9   :  { %1070 = vmatprep.subr.msk.mxu0 %vm422_vm1, %v630_v39  ;;  %1084 = vmatprep.subr.msk.mxu1 %vm422_vm1, %v851_v48 }
  0xca   :  { %1071 = vmatpush1.msk.msra.mxu0 %vm422_vm1, %v629_v45  ;;  %1085 = vmatpush1.msk.msra.mxu1 %vm422_vm1, %v850_v49 }
  0xcb   :  { %1065 = vmatmul.mubr.msk.f32.gmra.mxu0 %vm415_vm14, %v374_v47  ;;  %1069 = vmatmul.mubr.msk.f32.gmra.mxu1 %vm415_vm14, %v374_v47 }
  0xcc   :  { %737 = vmatprep.mubr.f32.mxu0 %v1196_v4  ;;  %958 = vmatprep.mubr.f32.mxu1 %v1196_v4 }
 0x187   :  { %v501_v50 = vpop.f32.mrf.mxu0  ;;  %v578_v51 = vpop.f32.mrf.mxu1 }
 0x188   :  { %v589_v52 = vmul.f32 0.1, %v501_v50  ;;  %v591_v53 = vmul.f32 0.1, %v578_v51 }
 0x189   :  { %v503_v54 = vpop.f32.mrf.mxu0  ;;  %v580_v55 = vpop.f32.mrf.mxu1 }
 0x18a   :  { %v597_v56 = vmax.f32 %v501_v50, %v589_v52  ;;  %v599_v57 = vmax.f32 %v578_v51, %v591_v53  ;;  %v590_v58 = vmul.f32 0.1, %v503_v54  ;;  %v592_v59 = vmul.f32 0.1, %v580_v55 }
 0x18b   :  { %v507_v60 = vpop.f32.mrf.mxu0  ;;  %v584_v61 = vpop.f32.mrf.mxu1 }
 0x18c   :  { %v598_v62 = vmax.f32 %v503_v54, %v590_v58  ;;  %v600_v63 = vmax.f32 %v580_v55, %v592_v59  ;;  %v593_v0 = vmul.f32 0.1, %v507_v60  ;;  %v595_v6 = vmul.f32 0.1, %v584_v61 }
 0x18d   :  { %v509_v7 = vpop.f32.mrf.mxu0  ;;  %v586_v8 = vpop.f32.mrf.mxu1 }
 0x18e   :  { %v601_v9 = vmax.f32 %v507_v60, %v593_v0  ;;  %v603_v10 = vmax.f32 %v584_v61, %v595_v6  ;;  %v594_v2 = vmul.f32 0.1, %v509_v7  ;;  %v596_v11 = vmul.f32 0.1, %v586_v8 }
 0x190   :  { %v602_v1 = vmax.f32 %v509_v7, %v594_v2  ;;  %v604_v12 = vmax.f32 %v586_v8, %v596_v11 }
 0x192   :  { %701 = vmatprep.subr.mxu0 %v602_v1  ;;  %922 = vmatprep.subr.mxu1 %v604_v12 }
 0x193   :  { %702 = vmatpush1.msra.mxu0 %v601_v9  ;;  %923 = vmatpush1.msra.mxu1 %v603_v10 }
 0x194   :  { %703 = vmatprep.subr.mxu0 %v598_v62  ;;  %924 = vmatprep.subr.mxu1 %v600_v63 }
 0x195   :  { %704 = vmatpush1.msra.mxu0 %v597_v56  ;;  %925 = vmatpush1.msra.mxu1 %v599_v57 }
 0x196   :  { %1072 = vmatmul.mubr.msk.f32.vlgmr.msra.gmra.mxu0 %vm57_vm13, %v613_v3  ;;  %1086 = vmatmul.mubr.msk.f32.vlgmr.msra.gmra.mxu1 %vm57_vm13, %v613_v3 }
 0x197   :  { %743 = vmatprep.mubr.f32.mxu0 %v1196_v4  ;;  %964 = vmatprep.mubr.f32.mxu1 %v1196_v4 }
 0x19a   :  { %1073 = vmatmul.mubr.msk.f32.gmra.mxu0 %vm57_vm13, %v614_v5  ;;  %1087 = vmatmul.mubr.msk.f32.gmra.mxu1 %vm57_vm13, %v614_v5 }
 0x19b   :  { %749 = vmatprep.mubr.f32.mxu0 %v1196_v4  ;;  %970 = vmatprep.mubr.f32.mxu1 %v1196_v4 }
 0x19e   :  { %1074 = vmatmul.mubr.msk.f32.gmra.mxu0 %vm57_vm13, %v615_v13  ;;  %1088 = vmatmul.mubr.msk.f32.gmra.mxu1 %vm57_vm13, %v615_v13 }
 0x19f   :  { %755 = vmatprep.mubr.f32.mxu0 %v1196_v4  ;;  %976 = vmatprep.mubr.f32.mxu1 %v1196_v4 }
 0x1a2   :  { %1075 = vmatmul.mubr.msk.f32.gmra.mxu0 %vm57_vm13, %v616_v14  ;;  %1089 = vmatmul.mubr.msk.f32.gmra.mxu1 %vm57_vm13, %v616_v14 }
 0x1a3   :  { %761 = vmatprep.mubr.f32.mxu0 %v1196_v4  ;;  %982 = vmatprep.mubr.f32.mxu1 %v1196_v4 }
 0x1a6   :  { %1076 = vmatmul.mubr.msk.f32.gmra.mxu0 %vm57_vm13, %v617_v15  ;;  %1090 = vmatmul.mubr.msk.f32.gmra.mxu1 %vm57_vm13, %v617_v15 }
 0x1a7   :  { %767 = vmatprep.mubr.f32.mxu0 %v1196_v4  ;;  %988 = vmatprep.mubr.f32.mxu1 %v1196_v4 }
 0x1aa   :  { %1077 = vmatmul.mubr.msk.f32.gmra.mxu0 %vm57_vm13, %v618_v16  ;;  %1091 = vmatmul.mubr.msk.f32.gmra.mxu1 %vm57_vm13, %v618_v16 }
 0x1ab   :  { %773 = vmatprep.mubr.f32.mxu0 %v1196_v4  ;;  %994 = vmatprep.mubr.f32.mxu1 %v1196_v4 }
 0x1ae   :  { %1078 = vmatmul.mubr.msk.f32.gmra.mxu0 %vm57_vm13, %v619_v18  ;;  %1092 = vmatmul.mubr.msk.f32.gmra.mxu1 %vm57_vm13, %v619_v18 }
 0x1af   :  { %779 = vmatprep.mubr.f32.mxu0 %v1196_v4  ;;  %1000 = vmatprep.mubr.f32.mxu1 %v1196_v4 }
 0x1b2   :  { %1079 = vmatmul.mubr.msk.f32.gmra.mxu0 %vm57_vm13, %v620_v19  ;;  %1093 = vmatmul.mubr.msk.f32.gmra.mxu1 %vm57_vm13, %v620_v19 }
 0x1b3   :  { %785 = vmatprep.mubr.f32.mxu0 %v1196_v4  ;;  %1006 = vmatprep.mubr.f32.mxu1 %v1196_v4 }
 0x1b6   :  { %1080 = vmatmul.mubr.msk.f32.gmra.mxu0 %vm57_vm13, %v621_v20  ;;  %1094 = vmatmul.mubr.msk.f32.gmra.mxu1 %vm57_vm13, %v621_v20 }
 0x1b7   :  { %791 = vmatprep.mubr.f32.mxu0 %v1196_v4  ;;  %1012 = vmatprep.mubr.f32.mxu1 %v1196_v4 }
 0x1ba   :  { %1081 = vmatmul.mubr.msk.f32.gmra.mxu0 %vm57_vm13, %v622_v21  ;;  %1095 = vmatmul.mubr.msk.f32.gmra.mxu1 %vm57_vm13, %v622_v21 }
 0x1bb   :  { %797 = vmatprep.mubr.f32.mxu0 %v1196_v4  ;;  %1018 = vmatprep.mubr.f32.mxu1 %v1196_v4 }
 0x1be   :  { %1082 = vmatmul.mubr.msk.f32.gmra.mxu0 %vm57_vm13, %v623_v23  ;;  %1096 = vmatmul.mubr.msk.f32.gmra.mxu1 %vm57_vm13, %v623_v23 }
 0x1bf   :  { %803 = vmatprep.mubr.f32.mxu0 %v1196_v4  ;;  %1024 = vmatprep.mubr.f32.mxu1 %v1196_v4 }
 0x1c2   :  { %1083 = vmatmul.mubr.msk.f32.gmra.mxu0 %vm57_vm13, %v624_v24  ;;  %1097 = vmatmul.mubr.msk.f32.gmra.mxu1 %vm57_vm13, %v845_v25 }
 0x256   :  { %v739_v26 = vpop.f32.mrf.mxu0  ;;  %v960_v27 = vpop.f32.mrf.mxu1 }
 0x257   :  { %810 = vst [vmem:[%s1632_s3] sm:$0xff] %v739_v26  ;;  %1098 = vst [vmem:[%s1632_s3 + $0xc0] sm:$0xff] %v960_v27 }
 0x258   :  { %v741_v4 = vpop.f32.mrf.mxu0  ;;  %v962_v28 = vpop.f32.mrf.mxu1 }
 0x259   :  { %811 = vst [vmem:[%s1632_s3 + $0x8] sm:$0xff] %v741_v4  ;;  %1099 = vst [vmem:[%s1632_s3 + $0xc8] sm:$0xff] %v962_v28 }
 0x25a   :  { %v745_v29 = vpop.f32.mrf.mxu0  ;;  %v966_v30 = vpop.f32.mrf.mxu1 }
 0x25b   :  { %812 = vst [vmem:[%s1632_s3 + $0x10] sm:$0xff] %v745_v29  ;;  %1100 = vst [vmem:[%s1632_s3 + $0xd0] sm:$0xff] %v966_v30 }
 0x25c   :  { %v747_v22 = vpop.f32.mrf.mxu0  ;;  %v968_v31 = vpop.f32.mrf.mxu1 }
 0x25d   :  { %813 = vst [vmem:[%s1632_s3 + $0x18] sm:$0xff] %v747_v22  ;;  %1101 = vst [vmem:[%s1632_s3 + $0xd8] sm:$0xff] %v968_v31 }
 0x25e   :  { %v751_v32 = vpop.f32.mrf.mxu0  ;;  %v972_v33 = vpop.f32.mrf.mxu1 }
 0x25f   :  { %814 = vst [vmem:[%s1632_s3 + $0x20] sm:$0xff] %v751_v32  ;;  %1102 = vst [vmem:[%s1632_s3 + $0xe0] sm:$0xff] %v972_v33 }
 0x260   :  { %v753_v34 = vpop.f32.mrf.mxu0  ;;  %v974_v35 = vpop.f32.mrf.mxu1 }
 0x261   :  { %815 = vst [vmem:[%s1632_s3 + $0x28] sm:$0xff] %v753_v34  ;;  %1103 = vst [vmem:[%s1632_s3 + $0xe8] sm:$0xff] %v974_v35 }
 0x262   :  { %v757_v36 = vpop.f32.mrf.mxu0  ;;  %v978_v37 = vpop.f32.mrf.mxu1 }
 0x263   :  { %816 = vst [vmem:[%s1632_s3 + $0x30] sm:$0xff] %v757_v36  ;;  %1104 = vst [vmem:[%s1632_s3 + $0xf0] sm:$0xff] %v978_v37 }
 0x264   :  { %v759_v17 = vpop.f32.mrf.mxu0  ;;  %v980_v38 = vpop.f32.mrf.mxu1 }
 0x265   :  { %817 = vst [vmem:[%s1632_s3 + $0x38] sm:$0xff] %v759_v17  ;;  %1105 = vst [vmem:[%s1632_s3 + $0xf8] sm:$0xff] %v980_v38 }
 0x266   :  { %v763_v40 = vpop.f32.mrf.mxu0  ;;  %v984_v41 = vpop.f32.mrf.mxu1 }
 0x267   :  { %818 = vst [vmem:[%s1632_s3 + $0x40] sm:$0xff] %v763_v40  ;;  %1106 = vst [vmem:[%s1632_s3 + $0x100] sm:$0xff] %v984_v41 }
 0x268   :  { %v765_v42 = vpop.f32.mrf.mxu0  ;;  %v986_v43 = vpop.f32.mrf.mxu1 }
 0x269   :  { %819 = vst [vmem:[%s1632_s3 + $0x48] sm:$0xff] %v765_v42  ;;  %1107 = vst [vmem:[%s1632_s3 + $0x108] sm:$0xff] %v986_v43 }
 0x26a   :  { %v769_v44 = vpop.f32.mrf.mxu0  ;;  %v990_v46 = vpop.f32.mrf.mxu1 }
 0x26b   :  { %820 = vst [vmem:[%s1632_s3 + $0x50] sm:$0xff] %v769_v44  ;;  %1108 = vst [vmem:[%s1632_s3 + $0x110] sm:$0xff] %v990_v46 }
 0x26c   :  { %v771_v47 = vpop.f32.mrf.mxu0  ;;  %v992_v39 = vpop.f32.mrf.mxu1 }
 0x26d   :  { %821 = vst [vmem:[%s1632_s3 + $0x58] sm:$0xff] %v771_v47  ;;  %1109 = vst [vmem:[%s1632_s3 + $0x118] sm:$0xff] %v992_v39 }
 0x26e   :  { %v775_v48 = vpop.f32.mrf.mxu0  ;;  %v996_v45 = vpop.f32.mrf.mxu1 }
 0x26f   :  { %822 = vst [vmem:[%s1632_s3 + $0x60] sm:$0xff] %v775_v48  ;;  %1110 = vst [vmem:[%s1632_s3 + $0x120] sm:$0xff] %v996_v45 }
 0x270   :  { %v777_v49 = vpop.f32.mrf.mxu0  ;;  %v998_v50 = vpop.f32.mrf.mxu1 }
 0x271   :  { %823 = vst [vmem:[%s1632_s3 + $0x68] sm:$0xff] %v777_v49  ;;  %1111 = vst [vmem:[%s1632_s3 + $0x128] sm:$0xff] %v998_v50 }
 0x272   :  { %v781_v51 = vpop.f32.mrf.mxu0  ;;  %v1002_v52 = vpop.f32.mrf.mxu1 }
 0x273   :  { %824 = vst [vmem:[%s1632_s3 + $0x70] sm:$0xff] %v781_v51  ;;  %1112 = vst [vmem:[%s1632_s3 + $0x130] sm:$0xff] %v1002_v52 }
 0x274   :  { %v783_v53 = vpop.f32.mrf.mxu0  ;;  %v1004_v54 = vpop.f32.mrf.mxu1 }
 0x275   :  { %825 = vst [vmem:[%s1632_s3 + $0x78] sm:$0xff] %v783_v53  ;;  %1113 = vst [vmem:[%s1632_s3 + $0x138] sm:$0xff] %v1004_v54 }
 0x276   :  { %v787_v55 = vpop.f32.mrf.mxu0  ;;  %v1008_v56 = vpop.f32.mrf.mxu1 }
 0x277   :  { %826 = vst [vmem:[%s1632_s3 + $0x80] sm:$0xff] %v787_v55  ;;  %1114 = vst [vmem:[%s1632_s3 + $0x140] sm:$0xff] %v1008_v56 }
 0x278   :  { %v789_v57 = vpop.f32.mrf.mxu0  ;;  %v1010_v58 = vpop.f32.mrf.mxu1 }
 0x279   :  { %827 = vst [vmem:[%s1632_s3 + $0x88] sm:$0xff] %v789_v57  ;;  %1115 = vst [vmem:[%s1632_s3 + $0x148] sm:$0xff] %v1010_v58 }
 0x27a   :  { %v793_v59 = vpop.f32.mrf.mxu0  ;;  %v1014_v60 = vpop.f32.mrf.mxu1 }
 0x27b   :  { %828 = vst [vmem:[%s1632_s3 + $0x90] sm:$0xff] %v793_v59  ;;  %1116 = vst [vmem:[%s1632_s3 + $0x150] sm:$0xff] %v1014_v60 }
 0x27c   :  { %v795_v61 = vpop.f32.mrf.mxu0  ;;  %v1016_v62 = vpop.f32.mrf.mxu1 }
 0x27d   :  { %829 = vst [vmem:[%s1632_s3 + $0x98] sm:$0xff] %v795_v61  ;;  %1117 = vst [vmem:[%s1632_s3 + $0x158] sm:$0xff] %v1016_v62 }
 0x27e   :  { %v799_v63 = vpop.f32.mrf.mxu0  ;;  %v1020_v0 = vpop.f32.mrf.mxu1 }
 0x27f   :  { %830 = vst [vmem:[%s1632_s3 + $0xa0] sm:$0xff] %v799_v63  ;;  %1118 = vst [vmem:[%s1632_s3 + $0x160] sm:$0xff] %v1020_v0 }
 0x280   :  { %v801_v6 = vpop.f32.mrf.mxu0  ;;  %v1022_v7 = vpop.f32.mrf.mxu1 }
 0x281   :  { %831 = vst [vmem:[%s1632_s3 + $0xa8] sm:$0xff] %v801_v6  ;;  %1119 = vst [vmem:[%s1632_s3 + $0x168] sm:$0xff] %v1022_v7 }
 0x282   :  { %v805_v8 = vpop.f32.mrf.mxu0  ;;  %v1026_v9 = vpop.f32.mrf.mxu1 }
 0x283   :  { %832 = vst [vmem:[%s1632_s3 + $0xb0] sm:$0x3] %v805_v8  ;;  %1120 = vst [vmem:[%s1632_s3 + $0x170] sm:$0x3] %v1026_v9 }
 0x284   :  { %v807_v10 = vpop.f32.mrf.mxu0  ;;  %v1028_v2 = vpop.f32.mrf.mxu1 }
 0x285   :  { %833 = vst [vmem:[%s1632_s3 + $0xb8] sm:$0x3] %v807_v10  ;;  %1121 = vst [vmem:[%s1632_s3 + $0x178] sm:$0x3] %v1028_v2 }

</bundles_post_ra>
